<compile_context>
chip_gen: v6e
topology: v6e:2x2x1
jax: 0.10.0
libtpu: 0.0.40
codegen_flags: <defaults>
</compile_context>

<pallas_src>
import jax
import jax.numpy as jnp
from jax.experimental import pallas as pl
from jax.experimental.pallas import tpu as pltpu

_LANE = 128
_SUBLANE = 8
# Cap one block at ~1 MiB: with double-buffered input + output that is
# ~4 MiB of VMEM, well inside the scoped limit on every TPU generation.
_MAX_BLOCK_BYTES = 1 << 20


def _identity_kernel(x_ref, o_ref):
    # forward() is a no-op on the stored input -> pass the tile through.
    o_ref[...] = x_ref[...]


def _choose_2d_layout(total_elems, itemsize):
    """Pick (rows, lanes) with rows*lanes == total_elems, lanes a multiple of
    128 and rows a multiple of 8, so blocks satisfy the (8,128) tiling rule
    with ZERO padding.  Prefers the widest lane-dense last dim that still
    allows an 8-sublane block under the byte cap (lane-dense output -> plain
    `vst`, no masked partial stores).  Returns None if impossible.
    The search is bounded by the byte cap (<= 256 iterations for f32).
    """
    best = None
    lanes = _LANE
    while lanes <= total_elems and lanes * _SUBLANE * itemsize <= _MAX_BLOCK_BYTES:
        if total_elems % lanes == 0:
            rows = total_elems // lanes
            if rows % _SUBLANE == 0:
                best = (rows, lanes)
        lanes += _LANE
    return best


def _choose_block_rows(rows, lanes, itemsize):
    """Largest multiple-of-8 divisor of `rows` whose block fits the byte cap."""
    cap_rows = max(_SUBLANE, _MAX_BLOCK_BYTES // (lanes * itemsize))
    best = _SUBLANE
    r = _SUBLANE
    limit = min(rows, cap_rows)
    while r <= limit:
        if rows % r == 0:
            best = r
        r += _SUBLANE
    return best


def identity_pallas(x2d, block_rows):
    """Aliased identity pass-through: output HBM buffer == input HBM buffer."""
    R, L = x2d.shape
    grid = (R // block_rows,)
    return pl.pallas_call(
        _identity_kernel,
        out_shape=jax.ShapeDtypeStruct((R, L), x2d.dtype),
        grid_spec=pltpu.PrefetchScalarGridSpec(
            num_scalar_prefetch=0,
            grid=grid,
            in_specs=[pl.BlockSpec((block_rows, L), lambda i: (i, 0))],
            out_specs=pl.BlockSpec((block_rows, L), lambda i: (i, 0)),
        ),
        input_output_aliases={0: 0},
        compiler_params=pltpu.CompilerParams(
            dimension_semantics=("parallel",),   # shard grid over both TCs (v7x)
            vmem_limit_bytes=48 << 20,           # headroom on v5e/v6e/v7x
        ),
    )(x2d)


class BaseModel:
    """JAX/Pallas mirror of the PyTorch BaseModel skeleton.

    Only the tensor-relevant methods are implemented; checkpoint / history
    file I/O from the original class is host-side logic, not kernel work.
    """

    def __init__(self):
        self.model_names = []
        self.running_metrics = {}
        self.input = None
        self.output = None
        self.opt = None

    def init(self, opt=None):
        self.opt = opt

    def set_input(self, input_data):
        # PyTorch stores NCHW; keep the same layout.
        self.input = input_data

    def forward(self):
        # PyTorch forward() is `pass`; no computation is performed on the
        # stored input.  Route it through the aliased Pallas identity kernel
        # (zero extra HBM allocation) when the element count factors into a
        # lane-dense (8k, 128m) slab; otherwise the faithful zero-cost no-op.
        x = self.input
        layout = _choose_2d_layout(x.size, x.dtype.itemsize)
        if layout is None:
            # Ragged size: truly faithful no-op (no pad/slice round trip).
            self.output = x
            return None
        rows, lanes = layout
        block_rows = _choose_block_rows(rows, lanes, x.dtype.itemsize)
        flat = x.reshape(rows, lanes)          # no padding, no extra slice
        out2d = identity_pallas(flat, block_rows)
        self.output = out2d.reshape(x.shape)
        return None  # matches PyTorch: forward returns nothing

    def test(self):
        # torch.no_grad() has no analogue needed here (no autodiff tracing).
        self.forward()


if __name__ == "__main__":
    key = jax.random.PRNGKey(0)
    x = jax.random.normal(key, (2, 4, 16, 16), dtype=jnp.float32)  # NCHW
    expected = jnp.copy(x)  # independent buffer (input slab is aliased)

    model = BaseModel()
    model.init(opt=None)
    model.set_input(x)
    model.test()

    out = jax.block_until_ready(model.output)
    assert out.shape == expected.shape
    assert out.dtype == expected.dtype
    assert jnp.array_equal(out, expected)
    print("KERNEL_OK")
</pallas_src>

<mosaic_0001>
module attributes {stable_mosaic.version = 11 : i64} {
  func.func @_identity_kernel(%arg0: i32, %arg1: memref<8x256xf32, #tpu.memory_space<vmem>>, %arg2: memref<8x256xf32, #tpu.memory_space<vmem>>) attributes {dimension_semantics = [#tpu.dimension_semantics<parallel>], iteration_bounds = array<i64: 1>, scalar_prefetch = 0 : i64, scratch_operands = 0 : i64, tpu.core_type = #tpu.core_type<tc>, window_params = [{transform_indices = @transform_0, window_bounds = array<i64: 8, 256>}, {transform_indices = @transform_1, window_bounds = array<i64: 8, 256>}]} {
    %c0 = arith.constant 0 : index
    %c0_0 = arith.constant 0 : index
    %0 = vector.load %arg1[%c0, %c0_0] : memref<8x256xf32, #tpu.memory_space<vmem>>, vector<8x256xf32>
    %c0_1 = arith.constant 0 : index
    %c0_2 = arith.constant 0 : index
    %1 = vector.load %arg2[%c0_1, %c0_2] : memref<8x256xf32, #tpu.memory_space<vmem>>, vector<8x256xf32>
    tpu.vector_store %arg2[%c0_1, %c0_2], %0 {strides = array<i32>} : memref<8x256xf32, #tpu.memory_space<vmem>>, vector<8x256xf32>,
    return
  }
  func.func @transform_0(%arg0: i32) -> (i32, i32) {
    %c0_i32 = arith.constant 0 : i32
    %c0_i32_0 = arith.constant 0 : i32
    return %arg0, %c0_i32 : i32, i32
  }
  func.func @transform_1(%arg0: i32) -> (i32, i32) {
    %c0_i32 = arith.constant 0 : i32
    %c0_i32_0 = arith.constant 0 : i32
    return %arg0, %c0_i32 : i32, i32
  }
}

</mosaic_0001>

<bundles_post_ra>
// kernel: tpu_custom_call.1
= control target key start
LH: loop header
LB: loop body
LE: loop exit
PB: predicated region body
PF: predicated region fallthrough
CT: control target
= control target key end

     0   :  { %6 = vsyncpa [#allocation3], 0  ;;  %s104_s0 = inlined_call_operand.hbm [shape: f32[8,256], index: 0, kind: input, shape index: {}, may-alias: {0,1}]   ;;  %s105_s1 = inlined_call_operand.hbm [shape: f32[8,256], index: 1, kind: output, shape index: {}, may-alias: {0,1}]  }
   0x1   :  { %7 = vsyncpa [#allocation4], 0  ;;  %s86_s6 = smov [#allocation2]  }
   0x2   :  { %s14_s7 = sshll.u32 %s86_s6, 4  ;;  %s15_s7 = int_to_ptr.vmem [resolvable:$true] %s14_s7 }
   0x3   :  { %s50_s8 = scalar_lea.vmem %s15_s7, 256  ;;  %p55_p1 = scmp.lt.s32.totalorder %s15_s7, %s15_s7 }
   0x4   :  { %p51_p0 = scmp.ne.s32.totalorder %s15_s7, %s50_s8  ;;  %p56_p2 = scmp.lt.s32.totalorder %s50_s8, %s50_s8 }
   0x6   :  { %p57_p3 = por %p56_p2, %p55_p1 }
   0x8   :  { %p58_p4 = pnand %p57_p3, %p51_p0 }
   0xa   :  { %61 = shalt.err (!%p58_p4)
}
   0xb   :  { %17 = dma.hbm_to_vmem [thread:$0]  %s104_s0, 256, %s15_s7, [#allocation3]  }
   0xc   :  { %82 = dma.done.wait [#allocation3], 256  }
   0xd   :  { %83 = vsyncadd [#allocation3], 4294967040  ;;  %s87_s11 = smov [#allocation5]   ;;  %v21_v0 = vld [vmem:[#allocation2] sm:$0xff]  ;;  %v22_v1 = vld [vmem:[#allocation2 + $0x8] sm:$0xff] }
   0xe   :  { %s31_s12 = sshll.u32 %s87_s11, 4  ;;  %23 = vst [vmem:[#allocation5] sm:$0xff] %v21_v0  ;;  %24 = vst [vmem:[#allocation5 + $0x8] sm:$0xff] %v22_v1  ;;  %s32_s12 = int_to_ptr.vmem [resolvable:$true] %s31_s12 }
   0xf   :  { %s62_s13 = scalar_lea.vmem %s32_s12, 256  ;;  %p67_p6 = scmp.lt.s32.totalorder %s32_s12, %s32_s12 }
  0x10   :  { %p63_p5 = scmp.ne.s32.totalorder %s32_s12, %s62_s13  ;;  %p68_p7 = scmp.lt.s32.totalorder %s62_s13, %s62_s13 }
  0x12   :  { %p69_p8 = por %p68_p7, %p67_p6 }
  0x14   :  { %p70_p9 = pnand %p69_p8, %p63_p5 }
  0x16   :  { %73 = shalt.err (!%p70_p9)
}
  0x17   :  { %34 = dma.vmem_to_hbm [thread:$0]  %s32_s12, 256, %s105_s1, [#allocation4]  }
  0x18   :  { %84 = dma.done.wait [#allocation4], 256  }
  0x19   :  { %85 = vsyncadd [#allocation4], 4294967040 }
  0x1a   :  { %38 = vsyncpa [#allocation3], 1 }
  0x1b   :  { %39 = vsyncpa [#allocation4], 1 }

</bundles_post_ra>
